<compile_context>
chip_gen: v5e
topology: v5e:2x2
jax: 0.10.0
libtpu: 0.0.40
codegen_flags: <defaults>
</compile_context>

<pallas_src>
import math

import jax
import jax.numpy as jnp
from jax.experimental import pallas as pl
from jax.experimental.pallas import tpu as pltpu


# ---------------------------------------------------------------------------
# Glue: graph -> Chebyshev polynomial stack (matches get_laplacian / remove_self_loop /
# ChebConv.cheb_polynomial; computed once for max(K)+1 and shared by all layers)
# ---------------------------------------------------------------------------
def cheb_polynomials(graph, k_plus_1, normalize=True):
    n = graph.shape[0]
    graph = graph * (1.0 - jnp.eye(n, dtype=graph.dtype))  # remove self loop
    if normalize:
        # NOTE: matches PyTorch get_laplacian exactly (isolated nodes -> inf, like torch).
        d = jnp.sum(graph, axis=-1) ** (-0.5)
        dmat = jnp.diag(d)
        lap = jnp.eye(n, dtype=graph.dtype) - dmat @ graph @ dmat
    else:
        lap = jnp.diag(jnp.sum(graph, axis=-1)) - graph
    lap = lap.astype(jnp.float32)
    polys = [jnp.eye(n, dtype=jnp.float32)]
    if k_plus_1 > 1:
        polys.append(lap)
    for _ in range(2, k_plus_1):
        polys.append(2.0 * (lap @ polys[-1]) - polys[-2])
    return jnp.stack(polys, axis=0)  # [Kmax+1, N, N]


# ---------------------------------------------------------------------------
# Fused Pallas kernel: all layers of (ChebConv + SwitchNorm1d(using_bn=False) + ReLU)
# for one batch sample per grid step.
# ---------------------------------------------------------------------------
def make_fused_kernel(layer_dims, n):
    """layer_dims: list of (K+1, Cin, Cout) per layer; n: number of graph nodes."""
    eps = 1e-5

    def kernel(*refs):
        # refs = (x_ref, t_ref, [W_ref, bgb_ref, sw_ref] * n_layers, o_ref)
        x_ref, t_ref = refs[0], refs[1]
        o_ref = refs[-1]

        h = x_ref[0].astype(jnp.float32)  # [N, C0] — current activation for this sample

        for layer_idx, (kp1, cin, cout) in enumerate(layer_dims):
            w_ref = refs[2 + 3 * layer_idx]    # [K+1, Cin, Cout]   VMEM
            bgb_ref = refs[3 + 3 * layer_idx]  # [3, Cout] (bias, gamma, beta)  VMEM
            sw_ref = refs[4 + 3 * layer_idx]   # [4] (w_m_in, w_m_ln, w_v_in, w_v_ln)  SMEM

            # ---- ChebConv: stage 1 is ONE matmul over the stacked polynomials ----
            # T_flat[: (K+1)*N] @ h  -> [(K+1)*N, Cin]  (k-major row blocks of N)
            tx = jnp.dot(t_ref[: kp1 * n, :], h, preferred_element_type=jnp.float32)

            # ---- stage 2: K+1 sublane-aligned slices @ W[k], accumulated in f32 ----
            acc = jnp.dot(tx[0:n, :], w_ref[0], preferred_element_type=jnp.float32)
            for k in range(1, kp1):
                acc = acc + jnp.dot(
                    tx[k * n:(k + 1) * n, :], w_ref[k],
                    preferred_element_type=jnp.float32,
                )
            y = acc + bgb_ref[0:1, :]  # + bias -> [N, Cout]

            # ---- SwitchNorm1d (using_bn=False), eval mode, biased variance ----
            # Instance-norm stats over nodes, per channel.
            mean_in = jnp.mean(y, axis=0, keepdims=True)                  # [1, Cout]
            var_in = jnp.mean((y - mean_in) ** 2, axis=0, keepdims=True)  # [1, Cout]
            # Layer-norm stats derived algebraically from the IN stats (no extra full pass).
            mean_ln = jnp.mean(mean_in)                                   # scalar
            var_ln = jnp.mean(var_in + (mean_in - mean_ln) ** 2)          # scalar

            mean = sw_ref[0] * mean_in + sw_ref[1] * mean_ln
            var = sw_ref[2] * var_in + sw_ref[3] * var_ln
            yn = (y - mean) * jax.lax.rsqrt(var + eps)
            yn = yn * bgb_ref[1:2, :] + bgb_ref[2:3, :]                   # gamma, beta

            # ---- ReLU ----
            h = jnp.maximum(yn, 0.0)

        o_ref[0] = h.astype(o_ref.dtype)

    return kernel


def chebsubnet_forward(x, graph, params, normalize=True):
    b, n, c0 = x.shape
    layer_dims = [(p["W"].shape[0], p["W"].shape[1], p["W"].shape[2]) for p in params]
    kmax_p1 = max(d[0] for d in layer_dims)
    c_last = layer_dims[-1][2]

    # Chebyshev stack computed once (lower orders are shared by all layers), flattened so
    # stage 1 of every layer is a single matmul against its leading (K_l+1)*N rows.
    t_flat = cheb_polynomials(graph, kmax_p1, normalize).reshape(kmax_p1 * n, n)

    const2 = lambda i: (0, 0)
    const3 = lambda i: (0, 0, 0)

    in_specs = [
        pl.BlockSpec((1, n, c0), lambda i: (i, 0, 0)),   # x, one sample per grid step
        pl.BlockSpec((kmax_p1 * n, n), const2),          # shared Chebyshev stack
    ]
    args = [x, t_flat]
    for p in params:
        kp1, cin, cout = p["W"].shape
        in_specs += [
            pl.BlockSpec((kp1, cin, cout), const3),                       # W
            pl.BlockSpec((3, cout), const2),                              # bias/gamma/beta
            pl.BlockSpec(memory_space=pltpu.MemorySpace.SMEM),            # mixture weights
        ]
        bgb = jnp.concatenate([p["b"], p["gamma"], p["beta"]], axis=0)    # [3, Cout]
        sw = jnp.concatenate([p["mw"], p["vw"]], axis=0)                  # [4]
        args += [p["W"], bgb, sw]

    kernel = make_fused_kernel(layer_dims, n)
    return pl.pallas_call(
        kernel,
        out_shape=jax.ShapeDtypeStruct((b, n, c_last), jnp.float32),
        grid=(b,),
        in_specs=in_specs,
        out_specs=pl.BlockSpec((1, n, c_last), lambda i: (i, 0, 0)),
        compiler_params=pltpu.CompilerParams(dimension_semantics=("parallel",)),
    )(*args)


# ---------------------------------------------------------------------------
# Parameter construction (deterministic, shapes per ChebSubNet.__init__)
# ---------------------------------------------------------------------------
def init_params(key, channels, Ks):
    params = []
    for i in range(1, len(channels)):
        in_c, out_c, K = channels[i - 1], channels[i], Ks[i - 1]
        key, kw = jax.random.split(key)
        # xavier_normal_ on a (K+1, 1, in_c, out_c) tensor:
        fan_in = 1 * in_c * out_c
        fan_out = (K + 1) * in_c * out_c
        std = math.sqrt(2.0 / (fan_in + fan_out))
        W = std * jax.random.normal(kw, (K + 1, in_c, out_c), jnp.float32)
        params.append(
            dict(
                W=W,                                             # [K+1, Cin, Cout]
                b=jnp.zeros((1, out_c), jnp.float32),            # ChebConv bias (zeros init)
                gamma=jnp.ones((1, out_c), jnp.float32),         # SwitchNorm weight
                beta=jnp.zeros((1, out_c), jnp.float32),         # SwitchNorm bias
                mw=jax.nn.softmax(jnp.ones((2,), jnp.float32)),  # mean mixture weights
                vw=jax.nn.softmax(jnp.ones((2,), jnp.float32)),  # var mixture weights
            )
        )
    return params


# Pure-JAX reference (same math, no Pallas) for a correctness check.
def chebsubnet_reference(x, graph, params, normalize=True):
    eps = 1e-5
    kmax_p1 = max(p["W"].shape[0] for p in params)
    t_all = cheb_polynomials(graph, kmax_p1, normalize)
    out = x
    for p in params:
        t = t_all[: p["W"].shape[0]]
        res = jnp.einsum("knm,bmc->kbnc", t, out)
        res = jnp.einsum("kbnc,kcd->kbnd", res, p["W"])
        y = jnp.sum(res, axis=0) + p["b"][None]                 # [B, N, Cout]
        mean_in = jnp.mean(y, axis=1, keepdims=True)
        var_in = jnp.mean((y - mean_in) ** 2, axis=1, keepdims=True)
        mean_ln = jnp.mean(y, axis=(1, 2), keepdims=True)
        var_ln = jnp.mean((y - mean_ln) ** 2, axis=(1, 2), keepdims=True)
        mean = p["mw"][0] * mean_in + p["mw"][1] * mean_ln
        var = p["vw"][0] * var_in + p["vw"][1] * var_ln
        yn = (y - mean) * jax.lax.rsqrt(var + eps)
        yn = yn * p["gamma"][None] + p["beta"][None]
        out = jnp.maximum(yn, 0.0)
    return out


if __name__ == "__main__":
    B, N = 2, 16
    channels = [4, 8, 8]
    Ks = [2, 3]

    key = jax.random.PRNGKey(0)
    kx, kg, kp = jax.random.split(key, 3)

    x = jax.random.normal(kx, (B, N, channels[0]), jnp.float32)
    # positive symmetric adjacency (row sums > 0 so D^{-1/2} is finite)
    g = jax.random.uniform(kg, (N, N), jnp.float32, minval=0.1, maxval=1.0)
    graph = 0.5 * (g + g.T)

    params = init_params(kp, channels, Ks)

    out = chebsubnet_forward(x, graph, params, normalize=True)
    out = jax.block_until_ready(out)

    ref = jax.block_until_ready(chebsubnet_reference(x, graph, params, normalize=True))
    assert out.shape == (B, N, channels[-1])
    assert jnp.allclose(out, ref, rtol=1e-4, atol=1e-4), float(jnp.max(jnp.abs(out - ref)))

    print("KERNEL_OK")
</pallas_src>

<mosaic_0001>
module attributes {stable_mosaic.version = 11 : i64} {
  func.func @kernel(%arg0: i32, %arg1: memref<1x16x4xf32, #tpu.memory_space<vmem>>, %arg2: memref<64x16xf32, #tpu.memory_space<vmem>>, %arg3: memref<3x4x8xf32, #tpu.memory_space<vmem>>, %arg4: memref<3x8xf32, #tpu.memory_space<vmem>>, %arg5: memref<4xf32, #tpu.memory_space<smem>>, %arg6: memref<4x8x8xf32, #tpu.memory_space<vmem>>, %arg7: memref<3x8xf32, #tpu.memory_space<vmem>>, %arg8: memref<4xf32, #tpu.memory_space<smem>>, %arg9: memref<1x16x8xf32, #tpu.memory_space<vmem>>) attributes {dimension_semantics = [#tpu.dimension_semantics<parallel>], iteration_bounds = array<i64: 2>, scalar_prefetch = 0 : i64, scratch_operands = 0 : i64, tpu.core_type = #tpu.core_type<tc>, window_params = [{transform_indices = @transform_0, window_bounds = array<i64: 1, 16, 4>}, {pipeline_mode = #tpu.pipeline_mode<synchronous>, transform_indices = @transform_1, window_bounds = array<i64: 64, 16>}, {pipeline_mode = #tpu.pipeline_mode<synchronous>, transform_indices = @transform_2, window_bounds = array<i64: 3, 4, 8>}, {pipeline_mode = #tpu.pipeline_mode<synchronous>, transform_indices = @transform_3, window_bounds = array<i64: 3, 8>}, {transform_indices = @transform_4, window_bounds = array<i64: 4>}, {pipeline_mode = #tpu.pipeline_mode<synchronous>, transform_indices = @transform_5, window_bounds = array<i64: 4, 8, 8>}, {pipeline_mode = #tpu.pipeline_mode<synchronous>, transform_indices = @transform_6, window_bounds = array<i64: 3, 8>}, {transform_indices = @transform_7, window_bounds = array<i64: 4>}, {transform_indices = @transform_8, window_bounds = array<i64: 1, 16, 8>}]} {
    %c0 = arith.constant 0 : index
    %c0_0 = arith.constant 0 : index
    %c0_1 = arith.constant 0 : index
    %0 = vector.load %arg1[%c0, %c0_0, %c0_1] : memref<1x16x4xf32, #tpu.memory_space<vmem>>, vector<1x16x4xf32>
    %1 = vector.shape_cast %0 : vector<1x16x4xf32> to vector<16x4xf32>
    %c0_2 = arith.constant 0 : index
    %c0_3 = arith.constant 0 : index
    %2 = vector.load %arg2[%c0_2, %c0_3] : memref<64x16xf32, #tpu.memory_space<vmem>>, vector<48x16xf32>
    %cst = arith.constant dense<0.000000e+00> : vector<48x4xf32>
    %3 = tpu.matmul %2, %1, %cst {dimension_numbers = #tpu.dot_dimension_numbers<[1], [0], [0], [1], [0, 0, 1, 1], [], []>} : vector<48x16xf32>, vector<16x4xf32>, vector<48x4xf32> -> vector<48x4xf32>
    %4 = vector.extract_strided_slice %3 {offsets = [0, 0], sizes = [16, 4], strides = [1, 1]} : vector<48x4xf32> to vector<16x4xf32>
    %c0_4 = arith.constant 0 : index
    %c0_5 = arith.constant 0 : index
    %c0_6 = arith.constant 0 : index
    %5 = vector.load %arg3[%c0_4, %c0_5, %c0_6] : memref<3x4x8xf32, #tpu.memory_space<vmem>>, vector<1x4x8xf32>
    %6 = vector.shape_cast %5 : vector<1x4x8xf32> to vector<4x8xf32>
    %cst_7 = arith.constant dense<0.000000e+00> : vector<16x8xf32>
    %7 = tpu.matmul %4, %6, %cst_7 {dimension_numbers = #tpu.dot_dimension_numbers<[1], [0], [0], [1], [0, 0, 1, 1], [], []>} : vector<16x4xf32>, vector<4x8xf32>, vector<16x8xf32> -> vector<16x8xf32>
    %8 = vector.extract_strided_slice %3 {offsets = [16, 0], sizes = [16, 4], strides = [1, 1]} : vector<48x4xf32> to vector<16x4xf32>
    %c1 = arith.constant 1 : index
    %c0_8 = arith.constant 0 : index
    %c0_9 = arith.constant 0 : index
    %9 = vector.load %arg3[%c1, %c0_8, %c0_9] : memref<3x4x8xf32, #tpu.memory_space<vmem>>, vector<1x4x8xf32>
    %10 = vector.shape_cast %9 : vector<1x4x8xf32> to vector<4x8xf32>
    %cst_10 = arith.constant dense<0.000000e+00> : vector<16x8xf32>
    %11 = tpu.matmul %8, %10, %cst_10 {dimension_numbers = #tpu.dot_dimension_numbers<[1], [0], [0], [1], [0, 0, 1, 1], [], []>} : vector<16x4xf32>, vector<4x8xf32>, vector<16x8xf32> -> vector<16x8xf32>
    %12 = arith.addf %7, %11 : vector<16x8xf32>
    %13 = vector.extract_strided_slice %3 {offsets = [32, 0], sizes = [16, 4], strides = [1, 1]} : vector<48x4xf32> to vector<16x4xf32>
    %c2 = arith.constant 2 : index
    %c0_11 = arith.constant 0 : index
    %c0_12 = arith.constant 0 : index
    %14 = vector.load %arg3[%c2, %c0_11, %c0_12] : memref<3x4x8xf32, #tpu.memory_space<vmem>>, vector<1x4x8xf32>
    %15 = vector.shape_cast %14 : vector<1x4x8xf32> to vector<4x8xf32>
    %cst_13 = arith.constant dense<0.000000e+00> : vector<16x8xf32>
    %16 = tpu.matmul %13, %15, %cst_13 {dimension_numbers = #tpu.dot_dimension_numbers<[1], [0], [0], [1], [0, 0, 1, 1], [], []>} : vector<16x4xf32>, vector<4x8xf32>, vector<16x8xf32> -> vector<16x8xf32>
    %17 = arith.addf %12, %16 : vector<16x8xf32>
    %c0_14 = arith.constant 0 : index
    %c0_15 = arith.constant 0 : index
    %18 = vector.load %arg4[%c0_14, %c0_15] : memref<3x8xf32, #tpu.memory_space<vmem>>, vector<1x8xf32>
    %19 = vector.broadcast %18 : vector<1x8xf32> to vector<16x8xf32>
    %20 = arith.addf %17, %19 : vector<16x8xf32>
    %cst_16 = arith.constant dense<0.000000e+00> : vector<8xf32>
    %21 = vector.multi_reduction <add>, %20, %cst_16 [0] : vector<16x8xf32> to vector<8xf32>
    %22 = vector.shape_cast %21 : vector<8xf32> to vector<1x8xf32>
    %cst_17 = arith.constant 1.600000e+01 : f32
    %23 = vector.broadcast %cst_17 : f32 to vector<1x8xf32>
    %24 = arith.divf %22, %23 : vector<1x8xf32>
    %25 = vector.broadcast %24 : vector<1x8xf32> to vector<16x8xf32>
    %26 = arith.subf %20, %25 : vector<16x8xf32>
    %27 = arith.mulf %26, %26 : vector<16x8xf32>
    %cst_18 = arith.constant dense<0.000000e+00> : vector<8xf32>
    %28 = vector.multi_reduction <add>, %27, %cst_18 [0] : vector<16x8xf32> to vector<8xf32>
    %29 = vector.shape_cast %28 : vector<8xf32> to vector<1x8xf32>
    %cst_19 = arith.constant 1.600000e+01 : f32
    %30 = vector.broadcast %cst_19 : f32 to vector<1x8xf32>
    %31 = arith.divf %29, %30 : vector<1x8xf32>
    %32 = vector.shape_cast %24 : vector<1x8xf32> to vector<1x1x8xf32>
    %cst_20 = arith.constant dense<0.000000e+00> : vector<1xf32>
    %33 = vector.multi_reduction <add>, %32, %cst_20 [1, 2] : vector<1x1x8xf32> to vector<1xf32>
    %34 = vector.shape_cast %33 : vector<1xf32> to vector<1x1x1xf32>
    %35 = vector.extract %34[0, 0, 0] : f32 from vector<1x1x1xf32>
    %cst_21 = arith.constant 8.000000e+00 : f32
    %36 = arith.divf %35, %cst_21 : f32
    %37 = vector.broadcast %36 : f32 to vector<1x8xf32>
    %38 = arith.subf %24, %37 : vector<1x8xf32>
    %39 = arith.mulf %38, %38 : vector<1x8xf32>
    %40 = arith.addf %31, %39 : vector<1x8xf32>
    %41 = vector.shape_cast %40 : vector<1x8xf32> to vector<1x1x8xf32>
    %cst_22 = arith.constant dense<0.000000e+00> : vector<1xf32>
    %42 = vector.multi_reduction <add>, %41, %cst_22 [1, 2] : vector<1x1x8xf32> to vector<1xf32>
    %43 = vector.shape_cast %42 : vector<1xf32> to vector<1x1x1xf32>
    %44 = vector.extract %43[0, 0, 0] : f32 from vector<1x1x1xf32>
    %cst_23 = arith.constant 8.000000e+00 : f32
    %45 = arith.divf %44, %cst_23 : f32
    %c0_24 = arith.constant 0 : index
    %46 = memref.load %arg5[%c0_24] : memref<4xf32, #tpu.memory_space<smem>>
    %47 = vector.broadcast %46 : f32 to vector<1x8xf32>
    %48 = arith.mulf %47, %24 : vector<1x8xf32>
    %c1_25 = arith.constant 1 : index
    %49 = memref.load %arg5[%c1_25] : memref<4xf32, #tpu.memory_space<smem>>
    %50 = arith.mulf %49, %36 : f32
    %51 = vector.broadcast %50 : f32 to vector<1x8xf32>
    %52 = arith.addf %48, %51 : vector<1x8xf32>
    %c2_26 = arith.constant 2 : index
    %53 = memref.load %arg5[%c2_26] : memref<4xf32, #tpu.memory_space<smem>>
    %54 = vector.broadcast %53 : f32 to vector<1x8xf32>
    %55 = arith.mulf %54, %31 : vector<1x8xf32>
    %c3 = arith.constant 3 : index
    %56 = memref.load %arg5[%c3] : memref<4xf32, #tpu.memory_space<smem>>
    %57 = arith.mulf %56, %45 : f32
    %58 = vector.broadcast %57 : f32 to vector<1x8xf32>
    %59 = arith.addf %55, %58 : vector<1x8xf32>
    %60 = vector.broadcast %52 : vector<1x8xf32> to vector<16x8xf32>
    %61 = arith.subf %20, %60 : vector<16x8xf32>
    %cst_27 = arith.constant 9.99999974E-6 : f32
    %62 = vector.broadcast %cst_27 : f32 to vector<1x8xf32>
    %63 = arith.addf %59, %62 : vector<1x8xf32>
    %64 = math.rsqrt %63 : vector<1x8xf32>
    %65 = vector.broadcast %64 : vector<1x8xf32> to vector<16x8xf32>
    %66 = arith.mulf %61, %65 : vector<16x8xf32>
    %c1_28 = arith.constant 1 : index
    %c0_29 = arith.constant 0 : index
    %67 = vector.load %arg4[%c1_28, %c0_29] : memref<3x8xf32, #tpu.memory_space<vmem>>, vector<1x8xf32>
    %68 = vector.broadcast %67 : vector<1x8xf32> to vector<16x8xf32>
    %69 = arith.mulf %66, %68 : vector<16x8xf32>
    %c2_30 = arith.constant 2 : index
    %c0_31 = arith.constant 0 : index
    %70 = vector.load %arg4[%c2_30, %c0_31] : memref<3x8xf32, #tpu.memory_space<vmem>>, vector<1x8xf32>
    %71 = vector.broadcast %70 : vector<1x8xf32> to vector<16x8xf32>
    %72 = arith.addf %69, %71 : vector<16x8xf32>
    %cst_32 = arith.constant 0.000000e+00 : f32
    %73 = vector.broadcast %cst_32 : f32 to vector<16x8xf32>
    %74 = arith.maximumf %72, %73 : vector<16x8xf32>
    %c0_33 = arith.constant 0 : index
    %c0_34 = arith.constant 0 : index
    %75 = vector.load %arg2[%c0_33, %c0_34] : memref<64x16xf32, #tpu.memory_space<vmem>>, vector<64x16xf32>
    %cst_35 = arith.constant dense<0.000000e+00> : vector<64x8xf32>
    %76 = tpu.matmul %75, %74, %cst_35 {dimension_numbers = #tpu.dot_dimension_numbers<[1], [0], [0], [1], [0, 0, 1, 1], [], []>} : vector<64x16xf32>, vector<16x8xf32>, vector<64x8xf32> -> vector<64x8xf32>
    %77 = vector.extract_strided_slice %76 {offsets = [0, 0], sizes = [16, 8], strides = [1, 1]} : vector<64x8xf32> to vector<16x8xf32>
    %c0_36 = arith.constant 0 : index
    %c0_37 = arith.constant 0 : index
    %c0_38 = arith.constant 0 : index
    %78 = vector.load %arg6[%c0_36, %c0_37, %c0_38] : memref<4x8x8xf32, #tpu.memory_space<vmem>>, vector<1x8x8xf32>
    %79 = vector.shape_cast %78 : vector<1x8x8xf32> to vector<8x8xf32>
    %cst_39 = arith.constant dense<0.000000e+00> : vector<16x8xf32>
    %80 = tpu.matmul %77, %79, %cst_39 {dimension_numbers = #tpu.dot_dimension_numbers<[1], [0], [0], [1], [0, 0, 1, 1], [], []>} : vector<16x8xf32>, vector<8x8xf32>, vector<16x8xf32> -> vector<16x8xf32>
    %81 = vector.extract_strided_slice %76 {offsets = [16, 0], sizes = [16, 8], strides = [1, 1]} : vector<64x8xf32> to vector<16x8xf32>
    %c1_40 = arith.constant 1 : index
    %c0_41 = arith.constant 0 : index
    %c0_42 = arith.constant 0 : index
    %82 = vector.load %arg6[%c1_40, %c0_41, %c0_42] : memref<4x8x8xf32, #tpu.memory_space<vmem>>, vector<1x8x8xf32>
    %83 = vector.shape_cast %82 : vector<1x8x8xf32> to vector<8x8xf32>
    %cst_43 = arith.constant dense<0.000000e+00> : vector<16x8xf32>
    %84 = tpu.matmul %81, %83, %cst_43 {dimension_numbers = #tpu.dot_dimension_numbers<[1], [0], [0], [1], [0, 0, 1, 1], [], []>} : vector<16x8xf32>, vector<8x8xf32>, vector<16x8xf32> -> vector<16x8xf32>
    %85 = arith.addf %80, %84 : vector<16x8xf32>
    %86 = vector.extract_strided_slice %76 {offsets = [32, 0], sizes = [16, 8], strides = [1, 1]} : vector<64x8xf32> to vector<16x8xf32>
    %c2_44 = arith.constant 2 : index
    %c0_45 = arith.constant 0 : index
    %c0_46 = arith.constant 0 : index
    %87 = vector.load %arg6[%c2_44, %c0_45, %c0_46] : memref<4x8x8xf32, #tpu.memory_space<vmem>>, vector<1x8x8xf32>
    %88 = vector.shape_cast %87 : vector<1x8x8xf32> to vector<8x8xf32>
    %cst_47 = arith.constant dense<0.000000e+00> : vector<16x8xf32>
    %89 = tpu.matmul %86, %88, %cst_47 {dimension_numbers = #tpu.dot_dimension_numbers<[1], [0], [0], [1], [0, 0, 1, 1], [], []>} : vector<16x8xf32>, vector<8x8xf32>, vector<16x8xf32> -> vector<16x8xf32>
    %90 = arith.addf %85, %89 : vector<16x8xf32>
    %91 = vector.extract_strided_slice %76 {offsets = [48, 0], sizes = [16, 8], strides = [1, 1]} : vector<64x8xf32> to vector<16x8xf32>
    %c3_48 = arith.constant 3 : index
    %c0_49 = arith.constant 0 : index
    %c0_50 = arith.constant 0 : index
    %92 = vector.load %arg6[%c3_48, %c0_49, %c0_50] : memref<4x8x8xf32, #tpu.memory_space<vmem>>, vector<1x8x8xf32>
    %93 = vector.shape_cast %92 : vector<1x8x8xf32> to vector<8x8xf32>
    %cst_51 = arith.constant dense<0.000000e+00> : vector<16x8xf32>
    %94 = tpu.matmul %91, %93, %cst_51 {dimension_numbers = #tpu.dot_dimension_numbers<[1], [0], [0], [1], [0, 0, 1, 1], [], []>} : vector<16x8xf32>, vector<8x8xf32>, vector<16x8xf32> -> vector<16x8xf32>
    %95 = arith.addf %90, %94 : vector<16x8xf32>
    %c0_52 = arith.constant 0 : index
    %c0_53 = arith.constant 0 : index
    %96 = vector.load %arg7[%c0_52, %c0_53] : memref<3x8xf32, #tpu.memory_space<vmem>>, vector<1x8xf32>
    %97 = vector.broadcast %96 : vector<1x8xf32> to vector<16x8xf32>
    %98 = arith.addf %95, %97 : vector<16x8xf32>
    %cst_54 = arith.constant dense<0.000000e+00> : vector<8xf32>
    %99 = vector.multi_reduction <add>, %98, %cst_54 [0] : vector<16x8xf32> to vector<8xf32>
    %100 = vector.shape_cast %99 : vector<8xf32> to vector<1x8xf32>
    %cst_55 = arith.constant 1.600000e+01 : f32
    %101 = vector.broadcast %cst_55 : f32 to vector<1x8xf32>
    %102 = arith.divf %100, %101 : vector<1x8xf32>
    %103 = vector.broadcast %102 : vector<1x8xf32> to vector<16x8xf32>
    %104 = arith.subf %98, %103 : vector<16x8xf32>
    %105 = arith.mulf %104, %104 : vector<16x8xf32>
    %cst_56 = arith.constant dense<0.000000e+00> : vector<8xf32>
    %106 = vector.multi_reduction <add>, %105, %cst_56 [0] : vector<16x8xf32> to vector<8xf32>
    %107 = vector.shape_cast %106 : vector<8xf32> to vector<1x8xf32>
    %cst_57 = arith.constant 1.600000e+01 : f32
    %108 = vector.broadcast %cst_57 : f32 to vector<1x8xf32>
    %109 = arith.divf %107, %108 : vector<1x8xf32>
    %110 = vector.shape_cast %102 : vector<1x8xf32> to vector<1x1x8xf32>
    %cst_58 = arith.constant dense<0.000000e+00> : vector<1xf32>
    %111 = vector.multi_reduction <add>, %110, %cst_58 [1, 2] : vector<1x1x8xf32> to vector<1xf32>
    %112 = vector.shape_cast %111 : vector<1xf32> to vector<1x1x1xf32>
    %113 = vector.extract %112[0, 0, 0] : f32 from vector<1x1x1xf32>
    %cst_59 = arith.constant 8.000000e+00 : f32
    %114 = arith.divf %113, %cst_59 : f32
    %115 = vector.broadcast %114 : f32 to vector<1x8xf32>
    %116 = arith.subf %102, %115 : vector<1x8xf32>
    %117 = arith.mulf %116, %116 : vector<1x8xf32>
    %118 = arith.addf %109, %117 : vector<1x8xf32>
    %119 = vector.shape_cast %118 : vector<1x8xf32> to vector<1x1x8xf32>
    %cst_60 = arith.constant dense<0.000000e+00> : vector<1xf32>
    %120 = vector.multi_reduction <add>, %119, %cst_60 [1, 2] : vector<1x1x8xf32> to vector<1xf32>
    %121 = vector.shape_cast %120 : vector<1xf32> to vector<1x1x1xf32>
    %122 = vector.extract %121[0, 0, 0] : f32 from vector<1x1x1xf32>
    %cst_61 = arith.constant 8.000000e+00 : f32
    %123 = arith.divf %122, %cst_61 : f32
    %c0_62 = arith.constant 0 : index
    %124 = memref.load %arg8[%c0_62] : memref<4xf32, #tpu.memory_space<smem>>
    %125 = vector.broadcast %124 : f32 to vector<1x8xf32>
    %126 = arith.mulf %125, %102 : vector<1x8xf32>
    %c1_63 = arith.constant 1 : index
    %127 = memref.load %arg8[%c1_63] : memref<4xf32, #tpu.memory_space<smem>>
    %128 = arith.mulf %127, %114 : f32
    %129 = vector.broadcast %128 : f32 to vector<1x8xf32>
    %130 = arith.addf %126, %129 : vector<1x8xf32>
    %c2_64 = arith.constant 2 : index
    %131 = memref.load %arg8[%c2_64] : memref<4xf32, #tpu.memory_space<smem>>
    %132 = vector.broadcast %131 : f32 to vector<1x8xf32>
    %133 = arith.mulf %132, %109 : vector<1x8xf32>
    %c3_65 = arith.constant 3 : index
    %134 = memref.load %arg8[%c3_65] : memref<4xf32, #tpu.memory_space<smem>>
    %135 = arith.mulf %134, %123 : f32
    %136 = vector.broadcast %135 : f32 to vector<1x8xf32>
    %137 = arith.addf %133, %136 : vector<1x8xf32>
    %138 = vector.broadcast %130 : vector<1x8xf32> to vector<16x8xf32>
    %139 = arith.subf %98, %138 : vector<16x8xf32>
    %cst_66 = arith.constant 9.99999974E-6 : f32
    %140 = vector.broadcast %cst_66 : f32 to vector<1x8xf32>
    %141 = arith.addf %137, %140 : vector<1x8xf32>
    %142 = math.rsqrt %141 : vector<1x8xf32>
    %143 = vector.broadcast %142 : vector<1x8xf32> to vector<16x8xf32>
    %144 = arith.mulf %139, %143 : vector<16x8xf32>
    %c1_67 = arith.constant 1 : index
    %c0_68 = arith.constant 0 : index
    %145 = vector.load %arg7[%c1_67, %c0_68] : memref<3x8xf32, #tpu.memory_space<vmem>>, vector<1x8xf32>
    %146 = vector.broadcast %145 : vector<1x8xf32> to vector<16x8xf32>
    %147 = arith.mulf %144, %146 : vector<16x8xf32>
    %c2_69 = arith.constant 2 : index
    %c0_70 = arith.constant 0 : index
    %148 = vector.load %arg7[%c2_69, %c0_70] : memref<3x8xf32, #tpu.memory_space<vmem>>, vector<1x8xf32>
    %149 = vector.broadcast %148 : vector<1x8xf32> to vector<16x8xf32>
    %150 = arith.addf %147, %149 : vector<16x8xf32>
    %cst_71 = arith.constant 0.000000e+00 : f32
    %151 = vector.broadcast %cst_71 : f32 to vector<16x8xf32>
    %152 = arith.maximumf %150, %151 : vector<16x8xf32>
    %c0_72 = arith.constant 0 : index
    %c0_73 = arith.constant 0 : index
    %c0_74 = arith.constant 0 : index
    %153 = vector.load %arg9[%c0_72, %c0_73, %c0_74] : memref<1x16x8xf32, #tpu.memory_space<vmem>>, vector<1x16x8xf32>
    %154 = vector.shape_cast %153 : vector<1x16x8xf32> to vector<16x8xf32>
    %155 = vector.shape_cast %152 : vector<16x8xf32> to vector<1x16x8xf32>
    tpu.vector_store %arg9[%c0_72, %c0_73, %c0_74], %155 {strides = array<i32>} : memref<1x16x8xf32, #tpu.memory_space<vmem>>, vector<1x16x8xf32>,
    return
  }
  func.func @transform_0(%arg0: i32) -> (i32, i32, i32) {
    %c0_i32 = arith.constant 0 : i32
    %c0_i32_0 = arith.constant 0 : i32
    %c0_i32_1 = arith.constant 0 : i32
    return %arg0, %c0_i32, %c0_i32_0 : i32, i32, i32
  }
  func.func @transform_1(%arg0: i32) -> (i32, i32) {
    %c0_i32 = arith.constant 0 : i32
    %c0_i32_0 = arith.constant 0 : i32
    %c0_i32_1 = arith.constant 0 : i32
    return %c0_i32, %c0_i32_0 : i32, i32
  }
  func.func @transform_2(%arg0: i32) -> (i32, i32, i32) {
    %c0_i32 = arith.constant 0 : i32
    %c0_i32_0 = arith.constant 0 : i32
    %c0_i32_1 = arith.constant 0 : i32
    %c0_i32_2 = arith.constant 0 : i32
    return %c0_i32, %c0_i32_0, %c0_i32_1 : i32, i32, i32
  }
  func.func @transform_3(%arg0: i32) -> (i32, i32) {
    %c0_i32 = arith.constant 0 : i32
    %c0_i32_0 = arith.constant 0 : i32
    %c0_i32_1 = arith.constant 0 : i32
    return %c0_i32, %c0_i32_0 : i32, i32
  }
  func.func @transform_4(%arg0: i32) -> i32 {
    %c0_i32 = arith.constant 0 : i32
    %c0_i32_0 = arith.constant 0 : i32
    return %c0_i32 : i32
  }
  func.func @transform_5(%arg0: i32) -> (i32, i32, i32) {
    %c0_i32 = arith.constant 0 : i32
    %c0_i32_0 = arith.constant 0 : i32
    %c0_i32_1 = arith.constant 0 : i32
    %c0_i32_2 = arith.constant 0 : i32
    return %c0_i32, %c0_i32_0, %c0_i32_1 : i32, i32, i32
  }
  func.func @transform_6(%arg0: i32) -> (i32, i32) {
    %c0_i32 = arith.constant 0 : i32
    %c0_i32_0 = arith.constant 0 : i32
    %c0_i32_1 = arith.constant 0 : i32
    return %c0_i32, %c0_i32_0 : i32, i32
  }
  func.func @transform_7(%arg0: i32) -> i32 {
    %c0_i32 = arith.constant 0 : i32
    %c0_i32_0 = arith.constant 0 : i32
    return %c0_i32 : i32
  }
  func.func @transform_8(%arg0: i32) -> (i32, i32, i32) {
    %c0_i32 = arith.constant 0 : i32
    %c0_i32_0 = arith.constant 0 : i32
    %c0_i32_1 = arith.constant 0 : i32
    return %arg0, %c0_i32, %c0_i32_0 : i32, i32, i32
  }
}

</mosaic_0001>

<bundles_post_ra>
// kernel: tpu_custom_call.1
= control target key start
LH: loop header
LB: loop body
LE: loop exit
PB: predicated region body
PF: predicated region fallthrough
CT: control target
= control target key end

     0   :  { %13 = vsyncpa [#allocation3], 0  ;;  %s1423_s0 = inlined_call_operand.vmem [shape: f32[2,16,4], index: 0, kind: input, shape index: {}]   ;;  %s1424_s1 = inlined_call_operand.vmem [shape: f32[64,16], index: 1, kind: input, shape index: {}]   ;;  %s1425_s2 = inlined_call_operand.vmem [shape: f32[3,4,8], index: 2, kind: input, shape index: {}]   ;;  %s1426_s3 = inlined_call_operand.vmem [shape: f32[3,8], index: 3, kind: input, shape index: {}]   ;;  %s1427_s4 = inlined_call_operand.vmem [shape: f32[4], index: 4, kind: input, shape index: {}]   ;;  %s1428_s5 = inlined_call_operand.vmem [shape: f32[4,8,8], index: 5, kind: input, shape index: {}]   ;;  %s1429_s6 = inlined_call_operand.vmem [shape: f32[3,8], index: 6, kind: input, shape index: {}]   ;;  %s1430_s7 = inlined_call_operand.vmem [shape: f32[4], index: 7, kind: input, shape index: {}]   ;;  %s1431_s8 = inlined_call_operand.vmem [shape: f32[2,16,8], index: 8, kind: output, shape index: {}]  }
   0x1   :  { %14 = vsyncpa [#allocation5], 0  ;;  %s1218_s27 = smov 0  }
   0x2 LB: > { %s1006_s28 = sadd.s32 4294967295, %s1167_s27   ;;  %p1008_p0 = scmp.ge.s32.totalorder %s1167_s27, 1  ;;  %s1167_s27 = sphi %s1218_s27, %s20_s27  }
   0x3   : > { %p224_p1 = scmp.lt.s32.totalorder %s1167_s27, 3  ;;  %s245_s9 = sshll.u32 %s1427_s4, 4  ;;  %s246_s9 = int_to_ptr.vmem [resolvable:$true] %s245_s9 }
   0x4   : > { %p1093_p3 = scmp.eq.s32.totalorder %s1006_s28, 0  ;;  %s261_s12 = sshll.u32 %s1430_s7, 4  ;;  %s262_s12 = int_to_ptr.vmem [resolvable:$true] %s261_s12 }
   0x5   : > { %p225_p2 = pnand %p1008_p0, %p224_p1  ;;  %s1169_s13 = smov [#allocation2]  }
   0x6   : > { %s1170_s14 = smov [#allocation4]  }
   0x7   : > { %p1086_p4 = pneg %p225_p2 }
   0x8   : > { %282 = sbr.rel (%p225_p2) target bundleno = 1493 (0x5d5), region = 52 }
   0x9   : > { %p1087_p5 = pnand %p1093_p3, %p1086_p4 }
   0xb   : > { %1089 = dma.vmem_to_smem (!%p1087_p5), %s246_s9, 16, %s1169_s13, [#allocation3]  }
   0xc   : > { %1092 = dma.vmem_to_smem (!%p1087_p5), %s262_s12, 16, %s1170_s14, [#allocation5]  }
   0xd   : > { %1158 = dma.done.wait (%p1093_p3), [#allocation3], 16  }
   0xe   : > { %1160 = vsyncadd (%p1093_p3), [#allocation3], 4294967280 }
   0xf   : > { %1162 = dma.done.wait (%p1093_p3), [#allocation5], 16  }
  0x10   : > { %1164 = vsyncadd (%p1093_p3), [#allocation5], 4294967280 }
  0x11   : > { %294 = sfence }
  0x12   : > { %p323_p6 = scmp.lt.s32.totalorder %s1006_s28, 1  ;;  %v1248_v2 = vld [vmem:[%s1424_s1] sm:$0xff]  ;;  %vm341_vm0 = vcmask 130048   ;;  %v1255_v3 = vld [vmem:[%s1424_s1 + $0x8] sm:$0xff]  ;;  %vm405_vm1 = vcmask 1043456   ;;  %v1265_v5 = vld [vmem:[%s1424_s1 + $0x10] sm:$0xff] }
  0x13   : > { %v1025_v4 = vld [vmem:[%s1425_s2 + $0x4] sm:$0xf]  ;;  %v1272_v6 = vld [vmem:[%s1424_s1 + $0x18] sm:$0xff]  ;;  %v1286_v8 = vld [vmem:[%s1424_s1 + $0x28] sm:$0xff]  ;;  %vm398_vm2 = vcmask 31744   ;;  %v1171_v21 = vmov 16.0  }
  0x14   : > { %s1433_s28 = smov (!%p323_p6, %s1006_s28), 1  ;;  %1065 = vmatpush.msk.msra.mxu2 %vm405_vm1, %v1025_v4  ;;  %v1279_v7 = vld [vmem:[%s1424_s1 + $0x20] sm:$0xff]  ;;  %v1032_v11 = vld [vmem:[%s1425_s2 + $0x8] sm:$0xf]  ;;  %1115 = vrcp.f32 %v1171_v21  ;;  %vm504_vm3 = vcmask 64512   ;;  %vm536_vm5 = vcmask 57344  }
  0x15   : > { %s1063_s15 = sshll.u32 %s1433_s28, 4  ;;  %v395_v9 = vld [vmem:[%s1425_s2] sm:$0xf]  ;;  %1033 = vmatpush.msk.msra.mxu3 %vm405_vm1, %v1032_v11  ;;  %v1172_v48 = vmov 8.0   ;;  %s1037_s23 = sld [smem:[#allocation2 + $0x2]] }
  0x16   : > { %s327_s18 = scalar_lea.vmem %s1423_s0, %s1063_s15  ;;  %1029 = vmatpush.msk.msrb.mxu2 %vm405_vm1, %v395_v9  ;;  %v1109_v24 = vld [vmem:[%s1426_s3] ss:$0 sm:$0xff]  ;;  %1117 = vrcp.f32 %v1172_v48  ;;  %s1038_s24 = sld [smem:[#allocation2 + $0x3]] }
  0x17   : > { %v334_v0 = vld [vmem:[%s327_s18 + $0x8] sm:$0xff]  ;;  %v333_v1 = vld [vmem:[%s327_s18] sm:$0xff]  ;;  %s1036_s30 = sld [smem:[#allocation2 + $0x1]] }
  0x18   : > { %374 = vmatpush.msra.mxu0 %v334_v0  ;;  %s579_s9 = sld [smem:[#allocation2]] }
  0x19   : > { %s1059_s13 = sld [smem:[#allocation4 + $0x2]] }
  0x1a   : > { %375 = vmatpush.msra.mxu0 %v333_v1  ;;  %v1116_v25 = vpop.eup %1115  ;;  %s1060_s14 = sld [smem:[#allocation4 + $0x3]] }
  0x1b   : > { %1019 = vmatmul.msk.f32.vlgmr.msra.gmra.mxu0 %vm341_vm0, %v1248_v2  ;;  %v515_v31 = vmul.f32 16.0, %v1116_v25  ;;  %vm519_vm4 = vweird.f32 %v1116_v25  ;;  %s1058_s19 = sld [smem:[#allocation4 + $0x1]] }
  0x1c   : > { %1026 = vmatpush.msk.msrb.mxu0 %vm405_vm1, %v1025_v4  ;;  %v1118_v49 = vpop.eup %1117 }
  0x1d   : > { %v516_v35 = vsub.f32 1.0, %v515_v31  ;;  %v548_v50 = vmul.f32 8.0, %v1118_v49  ;;  %vm552_vm6 = vweird.f32 %v1118_v49  ;;  %v587_v31 = vstv %s1037_s23 }
  0x1f   : > { %v517_v38 = vmul.f32 %v1116_v25, %v516_v35  ;;  %v549_v51 = vsub.f32 1.0, %v548_v50  ;;  %v1110_v50 = vld [vmem:[%s1426_s3 + $0x1] ss:$0 sm:$0xff] }
  0x21   : > { %v518_v41 = vadd.f32 %v1116_v25, %v517_v38  ;;  %v550_v55 = vmul.f32 %v1118_v49, %v549_v51  ;;  %v580_v38 = vstv %s579_s9 }
  0x23   : > { %1020 = vmatmul.msk.f32.gmra.mxu0 %vm341_vm0, %v1255_v3  ;;  %v1307_v44 = vsel %vm519_vm4, %v1116_v25, %v518_v41  ;;  %v551_v58 = vadd.f32 %v1118_v49, %v550_v55 }
  0x25   : > { %v553_v61 = vsel %vm552_vm6, %v1118_v49, %v551_v58 }
  0x2b   : > { %1021 = vmatmul.msk.f32.gmra.mxu0 %vm341_vm0, %v1265_v5 }
  0x33   : > { %1022 = vmatmul.msk.f32.gmra.mxu0 %vm341_vm0, %v1272_v6 }
  0x3b   : > { %1023 = vmatmul.msk.f32.gmra.mxu0 %vm341_vm0, %v1279_v7 }
  0x43   : > { %1024 = vmatmul.msk.f32.gmra.mxu0 %vm341_vm0, %v1286_v8 }
  0x98   : > { %v377_v10 = vpop.f32.mrf.mxu0 }
  0xa0   : > { %v380_v12 = vpop.f32.mrf.mxu0 }
  0xa8   : > { %v383_v13 = vpop.f32.mrf.mxu0 }
  0xa9   : > { %1027 = vmatmul.msk.f32.vlgmr.msrb.gmra.mxu0 %vm398_vm2, %v383_v13 }
  0xb0   : > { %v386_v14 = vpop.f32.mrf.mxu0 }
  0xb1   : > { %1028 = vmatmul.msk.f32.vlgmr.msra.gmra.mxu2 %vm398_vm2, %v386_v14 }
  0xb8   : > { %v389_v15 = vpop.f32.mrf.mxu0 }
  0xb9   : > { %1030 = vmatmul.msk.f32.vlgmr.msrb.gmra.mxu2 %vm398_vm2, %v377_v10  ;;  %1034 = vmatmul.msk.f32.vlgmr.msra.gmra.mxu3 %vm398_vm2, %v389_v15 }
  0xc0   : > { %v392_v16 = vpop.f32.mrf.mxu0 }
  0xc1   : > { %1031 = vmatmul.msk.f32.gmra.mxu2 %vm398_vm2, %v380_v12  ;;  %1035 = vmatmul.msk.f32.gmra.mxu3 %vm398_vm2, %v392_v16 }
 0x126   : > { %v426_v20 = vpop.f32.mrf.mxu0 }
 0x134   : > { %v429_v17 = vpop.f32.mrf.mxu2 }
 0x13c   : > { %v458_v18 = vpop.f32.mrf.mxu2  ;;  %v492_v19 = vpop.f32.mrf.mxu3 }
 0x13d   : > { %v459_v22 = vadd.f32 %v458_v18, %v426_v20 }
 0x13f   : > { %v498_v23 = vadd.f32 %v492_v19, %v459_v22 }
 0x141   : > { %v1299_v29 = vadd.f32 %v1109_v24, %v498_v23 }
 0x143   : > { %v505_v33 = vsel %vm504_vm3, %v1299_v29, 0.0 }
 0x144   : > { %v461_v26 = vpop.f32.mrf.mxu2  ;;  %v495_v27 = vpop.f32.mrf.mxu3 }
 0x145   : > { %v462_v28 = vadd.f32 %v461_v26, %v429_v17 }
 0x147   : > { %v499_v30 = vadd.f32 %v495_v27, %v462_v28 }
 0x149   : > { %v1301_v32 = vadd.f32 %v1109_v24, %v499_v30 }
 0x14b   : > { %v506_v34 = vsel %vm504_vm3, %v1301_v32, 0.0 }
 0x14c   : > { %v507_v36 = vadd.f32 %v506_v34, %v505_v33 }
 0x14e   : > { %v508_v37 = vrot.slane %v507_v36, 4 }
 0x150   : > { %v509_v39 = vadd.f32 %v508_v37, %v507_v36 }
 0x152   : > { %v510_v40 = vrot.slane %v509_v39, 2 }
 0x154   : > { %v511_v42 = vadd.f32 %v510_v40, %v509_v39 }
 0x156   : > { %v512_v43 = vrot.slane %v511_v42, 1 }
 0x158   : > { %v513_v45 = vadd.f32 %v512_v43, %v511_v42 }
 0x15a   : > { %v1310_v46 = vmul.f32 %v1307_v44, %v513_v45 }
 0x15c   : > { %v537_v47 = vsel %vm536_vm5, %v1310_v46, 0.0  ;;  %v522_v62 = vsub.f32 %v1299_v29, %v1310_v46  ;;  %v523_v63 = vsub.f32 %v1301_v32, %v1310_v46  ;;  %v581_v42 = vmul.f32 %v580_v38, %v1310_v46 }
 0x15d   : > { %538 = vadd.xlane.f32.xlu0 %v537_v47 }
 0x15e   : > { %v524_v0 = vmul.f32 %v522_v62, %v522_v62  ;;  %v525_v1 = vmul.f32 %v523_v63, %v523_v63 }
 0x160   : > { %v526_v4 = vsel %vm504_vm3, %v524_v0, 0.0  ;;  %v527_v9 = vsel %vm504_vm3, %v525_v1, 0.0 }
 0x161   : > { %v528_v10 = vadd.f32 %v527_v9, %v526_v4 }
 0x163   : > { %v529_v11 = vrot.slane %v528_v10, 4 }
 0x165   : > { %v530_v12 = vadd.f32 %v529_v11, %v528_v10 }
 0x167   : > { %v531_v13 = vrot.slane %v530_v12, 2 }
 0x169   : > { %v532_v14 = vadd.f32 %v531_v13, %v530_v12 }
 0x16b   : > { %v533_v15 = vrot.slane %v532_v14, 1 }
 0x16d   : > { %v534_v16 = vadd.f32 %v533_v15, %v532_v14 }
 0x16f   : > { %v535_v19 = vmul.f32 %v534_v16, %v1307_v44 }
 0x171   : > { %v588_v33 = vmul.f32 %v587_v31, %v535_v19 }
 0x1d0   : > { %v539_v52 = vpop.xlane.xlu0 %538 }
 0x1d1   : > { %v540_v53 = vrot.slane %v539_v52, 4 }
 0x1d3   : > { %v541_v54 = vadd.f32 %v540_v53, %v539_v52 }
 0x1d5   : > { %v542_v56 = vrot.slane %v541_v54, 2 }
 0x1d7   : > { %v543_v57 = vadd.f32 %v542_v56, %v541_v54 }
 0x1d9   : > { %v544_v59 = vrot.slane %v543_v57, 1 }
 0x1db   : > { %v545_v60 = vadd.f32 %v544_v59, %v543_v57 }
 0x1dd   : > { %1068 = vpush %v545_v60 }
 0x1de   : > { %1070 = vpush %v553_v61 }
 0x20e   : > { %s1069_s20 = spop %1068 }
 0x20f   : > { %s1320_s21 = spop %1070 }
 0x210   : > { %s1323_s22 = smul.f32 %s1320_s21, %s1069_s20  ;;  %s888_s20 = sld [smem:[#allocation4]] }
 0x212   : > { %v556_v17 = vstv %s1323_s22  ;;  %s583_s10 = smul.f32 %s1036_s30, %s1323_s22  ;;  %s332_s30 = scalar_lea.vmem %s1431_s8, %s1063_s15 }
 0x213   : > { %v557_v18 = vsub.f32 %v1310_v46, %v556_v17  ;;  %v1111_v46 = vld [vmem:[%s1426_s3 + $0x2] ss:$0 sm:$0xff] }
 0x214   : > { %v584_v40 = vstv %s583_s10 }
 0x215   : > { %v558_v20 = vmul.f32 %v557_v18, %v557_v18  ;;  %v585_v45 = vadd.f32 %v584_v40, %v581_v42 }
 0x217   : > { %v559_v21 = vadd.f32 %v558_v20, %v535_v19  ;;  %v594_v49 = vsub.f32 %v1301_v32, %v585_v45  ;;  %v593_v51 = vsub.f32 %v1299_v29, %v585_v45  ;;  %v625_v29 = vld [vmem:[%s1424_s1 + $0x38] sm:$0xff]  ;;  %v1112_v20 = vld [vmem:[%s1429_s6] ss:$0 sm:$0xff] }
 0x219   : > { %v560_v22 = vsel %vm536_vm5, %v559_v21, 0.0 }
 0x21a   : > { %561 = vadd.xlane.f32.xlu0 %v560_v22 }
 0x28d   : > { %v562_v23 = vpop.xlane.xlu0 %561 }
 0x28e   : > { %v563_v24 = vrot.slane %v562_v23, 4 }
 0x290   : > { %v564_v25 = vadd.f32 %v563_v24, %v562_v23 }
 0x292   : > { %v565_v26 = vrot.slane %v564_v25, 2 }
 0x294   : > { %v566_v27 = vadd.f32 %v565_v26, %v564_v25 }
 0x296   : > { %v567_v28 = vrot.slane %v566_v27, 1 }
 0x298   : > { %v568_v30 = vadd.f32 %v567_v28, %v566_v27 }
 0x29a   : > { %1072 = vpush %v568_v30 }
 0x2cb   : > { %s1073_s25 = spop %1072 }
 0x2cc   : > { %s578_s26 = smul.f32 %s1073_s25, %s1320_s21 }
 0x2ce   : > { %s590_s29 = smul.f32 %s1038_s24, %s578_s26 }
 0x2d0   : > { %v591_v34 = vstv %s590_s29 }
 0x2d1   : > { %v592_v35 = vadd.f32 %v591_v34, %v588_v33 }
 0x2d3   : > { %v595_v36 = vadd.f32 1e-05, %v592_v35 }
 0x2d5   : > { %1119 = vrsqrt.f32 %v595_v36  ;;  %vm602_vm8 = vweird.f32 %v595_v36 }
 0x2db   : > { %v1120_v37 = vpop.eup %1119 }
 0x2dc   : > { %v597_v39 = vmul.f32 %v1120_v37, %v595_v36  ;;  %vm603_vm7 = vweird.f32 %v1120_v37 }
 0x2dd   : > { %vm604_vm9 = vmor %vm602_vm8, %vm603_vm7 }
 0x2de   : > { %v598_v41 = vmul.f32 %v1120_v37, %v597_v39 }
 0x2e0   : > { %v599_v43 = vmul.f32 0.5, %v598_v41 }
 0x2e2   : > { %v600_v47 = vsub.f32 1.5, %v599_v43 }
 0x2e4   : > { %v601_v48 = vmul.f32 %v1120_v37, %v600_v47 }
 0x2e6   : > { %v605_v52 = vsel %vm604_vm9, %v1120_v37, %v601_v48 }
 0x2e7   : > { %v607_v53 = vmul.f32 %v605_v52, %v594_v49  ;;  %v606_v54 = vmul.f32 %v605_v52, %v593_v51 }
 0x2e9   : > { %v611_v55 = vmul.f32 %v1110_v50, %v607_v53  ;;  %v610_v56 = vmul.f32 %v1110_v50, %v606_v54 }
 0x2eb   : > { %v615_v57 = vadd.f32 %v1111_v46, %v611_v55  ;;  %v614_v58 = vadd.f32 %v1111_v46, %v610_v56 }
 0x2ed   : > { %v617_v59 = vmax.f32 %v615_v57, 0.0  ;;  %v616_v32 = vmax.f32 %v614_v58, 0.0 }
 0x2ef   : > { %664 = vmatpush.msra.mxu1 %v617_v59  ;;  %1066 = vmatpush.msrb.mxu3 %v617_v59 }
 0x2f1   : > { %665 = vmatpush.msra.mxu1 %v616_v32  ;;  %1067 = vmatpush.msrb.mxu3 %v616_v32 }
 0x2f2   : > { %1039 = vmatmul.msk.f32.vlgmr.msra.gmra.mxu1 %vm341_vm0, %v1248_v2  ;;  %1046 = vmatmul.msk.f32.vlgmr.msrb.gmra.mxu3 %vm341_vm0, %v625_v29  ;;  %v624_v2 = vld [vmem:[%s1424_s1 + $0x30] sm:$0xff] }
 0x2fa   : > { %1040 = vmatmul.msk.f32.gmra.mxu1 %vm341_vm0, %v1255_v3  ;;  %v691_v3 = vld [vmem:[%s1428_s5] sm:$0xff] }
 0x2fb   : > { %744 = vmatpush.msra.mxu3 %v691_v3 }
 0x302   : > { %1041 = vmatmul.msk.f32.gmra.mxu1 %vm341_vm0, %v1265_v5  ;;  %v1047_v5 = vld [vmem:[%s1428_s5 + $0x8] sm:$0xff] }
 0x303   : > { %715 = vmatpush.msra.mxu2 %v1047_v5 }
 0x30a   : > { %1042 = vmatmul.msk.f32.gmra.mxu1 %vm341_vm0, %v1272_v6  ;;  %v1052_v6 = vld [vmem:[%s1428_s5 + $0x10] sm:$0xff] }
 0x30b   : > { %775 = vmatpush.msrb.mxu2 %v1052_v6 }
 0x312   : > { %1043 = vmatmul.msk.f32.gmra.mxu1 %vm341_vm0, %v1279_v7 }
 0x31a   : > { %1044 = vmatmul.msk.f32.gmra.mxu1 %vm341_vm0, %v1286_v8  ;;  %v1055_v8 = vld [vmem:[%s1428_s5 + $0x18] sm:$0xff] }
 0x31b   : > { %808 = vmatpush.msrb.mxu3 %v1055_v8 }
 0x322   : > { %1045 = vmatmul.msk.f32.gmra.mxu1 %vm341_vm0, %v624_v2 }
 0x36f   : > { %v667_v7 = vpop.f32.mrf.mxu1 }
 0x370   : > { %1050 = vmatmul.msk.f32.vlgmr.msra.gmra.mxu3 %vm504_vm3, %v667_v7 }
 0x375   : > { %v688_v4 = vpop.f32.mrf.mxu3 }
 0x377   : > { %v670_v60 = vpop.f32.mrf.mxu1 }
 0x378   : > { %1051 = vmatmul.msk.f32.gmra.mxu3 %vm504_vm3, %v670_v60 }
 0x37f   : > { %v673_v61 = vpop.f32.mrf.mxu1 }
 0x380   : > { %1048 = vmatmul.msk.f32.vlgmr.msra.gmra.mxu2 %vm504_vm3, %v673_v61 }
 0x387   : > { %v676_v62 = vpop.f32.mrf.mxu1 }
 0x388   : > { %1049 = vmatmul.msk.f32.gmra.mxu2 %vm504_vm3, %v676_v62 }
 0x38f   : > { %v679_v63 = vpop.f32.mrf.mxu1 }
 0x390   : > { %1053 = vmatmul.msk.f32.vlgmr.msrb.gmra.mxu2 %vm504_vm3, %v679_v63 }
 0x397   : > { %v682_v0 = vpop.f32.mrf.mxu1 }
 0x398   : > { %1054 = vmatmul.msk.f32.gmra.mxu2 %vm504_vm3, %v682_v0 }
 0x39f   : > { %v685_v1 = vpop.f32.mrf.mxu1 }
 0x3a0   : > { %1056 = vmatmul.msk.f32.vlgmr.msrb.gmra.mxu3 %vm504_vm3, %v685_v1  ;;  %v896_v1 = vstv %s1059_s13 }
 0x3a8   : > { %1057 = vmatmul.msk.f32.gmra.mxu3 %vm504_vm3, %v688_v4 }
 0x3f3   : > { %v746_v10 = vpop.f32.mrf.mxu3 }
 0x3fb   : > { %v749_v12 = vpop.f32.mrf.mxu3 }
 0x403   : > { %v717_v9 = vpop.f32.mrf.mxu2 }
 0x404   : > { %v747_v15 = vadd.f32 %v746_v10, %v717_v9 }
 0x40b   : > { %v720_v11 = vpop.f32.mrf.mxu2 }
 0x40c   : > { %v750_v18 = vadd.f32 %v749_v12, %v720_v11  ;;  %v889_v12 = vstv %s888_s20 }
 0x413   : > { %v777_v13 = vpop.f32.mrf.mxu2 }
 0x414   : > { %v783_v16 = vadd.f32 %v777_v13, %v747_v15 }
 0x41b   : > { %v780_v17 = vpop.f32.mrf.mxu2 }
 0x41c   : > { %v784_v21 = vadd.f32 %v780_v17, %v750_v18 }
 0x423   : > { %v810_v14 = vpop.f32.mrf.mxu3 }
 0x424   : > { %v816_v19 = vadd.f32 %v810_v14, %v783_v16 }
 0x426   : > { %v1383_v23 = vadd.f32 %v1112_v20, %v816_v19 }
 0x428   : > { %v822_v26 = vsel %vm504_vm3, %v1383_v23, 0.0 }
 0x42b   : > { %v813_v22 = vpop.f32.mrf.mxu3 }
 0x42c   : > { %v817_v24 = vadd.f32 %v813_v22, %v784_v21 }
 0x42e   : > { %v1385_v25 = vadd.f32 %v1112_v20, %v817_v24  ;;  %v1113_v24 = vld [vmem:[%s1429_s6 + $0x1] ss:$0 sm:$0xff] }
 0x430   : > { %v823_v27 = vsel %vm504_vm3, %v1385_v25, 0.0 }
 0x431   : > { %v824_v28 = vadd.f32 %v823_v27, %v822_v26 }
 0x433   : > { %v825_v30 = vrot.slane %v824_v28, 4 }
 0x435   : > { %v826_v31 = vadd.f32 %v825_v30, %v824_v28  ;;  %v1114_v30 = vld [vmem:[%s1429_s6 + $0x2] ss:$0 sm:$0xff] }
 0x437   : > { %v827_v33 = vrot.slane %v826_v31, 2 }
 0x439   : > { %v828_v34 = vadd.f32 %v827_v33, %v826_v31 }
 0x43b   : > { %v829_v35 = vrot.slane %v828_v34, 1 }
 0x43d   : > { %v830_v36 = vadd.f32 %v829_v35, %v828_v34 }
 0x43f   : > { %v831_v37 = vmul.f32 %v830_v36, %v1307_v44 }
 0x441   : > { %v846_v38 = vsel %vm536_vm5, %v831_v37, 0.0  ;;  %v832_v48 = vsub.f32 %v1383_v23, %v831_v37  ;;  %v833_v49 = vsub.f32 %v1385_v25, %v831_v37  ;;  %v890_v16 = vmul.f32 %v889_v12, %v831_v37 }
 0x442   : > { %847 = vadd.xlane.f32.xlu1 %v846_v38 }
 0x443   : > { %v834_v50 = vmul.f32 %v832_v48, %v832_v48  ;;  %v835_v51 = vmul.f32 %v833_v49, %v833_v49 }
 0x445   : > { %v836_v52 = vsel %vm504_vm3, %v834_v50, 0.0  ;;  %v837_v53 = vsel %vm504_vm3, %v835_v51, 0.0 }
 0x446   : > { %v838_v46 = vadd.f32 %v837_v53, %v836_v52 }
 0x448   : > { %v839_v54 = vrot.slane %v838_v46, 4 }
 0x44a   : > { %v840_v55 = vadd.f32 %v839_v54, %v838_v46 }
 0x44c   : > { %v841_v56 = vrot.slane %v840_v55, 2 }
 0x44e   : > { %v842_v57 = vadd.f32 %v841_v56, %v840_v55 }
 0x450   : > { %v843_v58 = vrot.slane %v842_v57, 1 }
 0x452   : > { %v844_v59 = vadd.f32 %v843_v58, %v842_v57 }
 0x454   : > { %v845_v3 = vmul.f32 %v844_v59, %v1307_v44 }
 0x456   : > { %v897_v44 = vmul.f32 %v896_v1, %v845_v3 }
 0x4b5   : > { %v848_v39 = vpop.xlane.xlu1 %847 }
 0x4b6   : > { %v849_v40 = vrot.slane %v848_v39, 4 }
 0x4b8   : > { %v850_v41 = vadd.f32 %v849_v40, %v848_v39 }
 0x4ba   : > { %v851_v42 = vrot.slane %v850_v41, 2 }
 0x4bc   : > { %v852_v43 = vadd.f32 %v851_v42, %v850_v41 }
 0x4be   : > { %v853_v45 = vrot.slane %v852_v43, 1 }
 0x4c0   : > { %v854_v47 = vadd.f32 %v853_v45, %v852_v43 }
 0x4c2   : > { %1074 = vpush %v854_v47 }
 0x4f3   : > { %s1075_s11 = spop %1074 }
 0x4f4   : > { %s1398_s12 = smul.f32 %s1075_s11, %s1320_s21 }
 0x4f6   : > { %v865_v32 = vstv %s1398_s12  ;;  %s892_s22 = smul.f32 %s1058_s19, %s1398_s12 }
 0x4f7   : > { %v866_v29 = vsub.f32 %v831_v37, %v865_v32 }
 0x4f8   : > { %v893_v14 = vstv %s892_s22 }
 0x4f9   : > { %v867_v2 = vmul.f32 %v866_v29, %v866_v29  ;;  %v894_v18 = vadd.f32 %v893_v14, %v890_v16 }
 0x4fb   : > { %v868_v5 = vadd.f32 %v867_v2, %v845_v3  ;;  %v902_v21 = vsub.f32 %v1383_v23, %v894_v18  ;;  %v903_v22 = vsub.f32 %v1385_v25, %v894_v18 }
 0x4fd   : > { %v869_v6 = vsel %vm536_vm5, %v868_v5, 0.0 }
 0x4fe   : > { %870 = vadd.xlane.f32.xlu1 %v869_v6 }
 0x571   : > { %v871_v7 = vpop.xlane.xlu1 %870 }
 0x572   : > { %v872_v8 = vrot.slane %v871_v7, 4 }
 0x574   : > { %v873_v60 = vadd.f32 %v872_v8, %v871_v7 }
 0x576   : > { %v874_v61 = vrot.slane %v873_v60, 2 }
 0x578   : > { %v875_v62 = vadd.f32 %v874_v61, %v873_v60 }
 0x57a   : > { %v876_v63 = vrot.slane %v875_v62, 1 }
 0x57c   : > { %v877_v0 = vadd.f32 %v876_v63, %v875_v62 }
 0x57e   : > { %1076 = vpush %v877_v0 }
 0x5af   : > { %s1077_s16 = spop %1076 }
 0x5b0   : > { %s887_s17 = smul.f32 %s1077_s16, %s1320_s21 }
 0x5b2   : > { %s899_s18 = smul.f32 %s1060_s14, %s887_s17 }
 0x5b4   : > { %v900_v4 = vstv %s899_s18 }
 0x5b5   : > { %v901_v9 = vadd.f32 %v900_v4, %v897_v44 }
 0x5b7   : > { %v904_v10 = vadd.f32 1e-05, %v901_v9 }
 0x5b9   : > { %1121 = vrsqrt.f32 %v904_v10  ;;  %vm911_vm11 = vweird.f32 %v904_v10 }
 0x5bf   : > { %v1122_v11 = vpop.eup %1121 }
 0x5c0   : > { %v906_v13 = vmul.f32 %v1122_v11, %v904_v10  ;;  %vm912_vm10 = vweird.f32 %v1122_v11 }
 0x5c1   : > { %vm913_vm12 = vmor %vm911_vm11, %vm912_vm10 }
 0x5c2   : > { %v907_v15 = vmul.f32 %v1122_v11, %v906_v13 }
 0x5c4   : > { %v908_v17 = vmul.f32 0.5, %v907_v15 }
 0x5c6   : > { %v909_v19 = vsub.f32 1.5, %v908_v17 }
 0x5c8   : > { %v910_v20 = vmul.f32 %v1122_v11, %v909_v19 }
 0x5ca   : > { %v914_v26 = vsel %vm913_vm12, %v1122_v11, %v910_v20 }
 0x5cb   : > { %v915_v27 = vmul.f32 %v914_v26, %v902_v21  ;;  %v916_v28 = vmul.f32 %v914_v26, %v903_v22 }
 0x5cd   : > { %v919_v31 = vmul.f32 %v1113_v24, %v915_v27  ;;  %v920_v33 = vmul.f32 %v1113_v24, %v916_v28 }
 0x5cf   : > { %v923_v34 = vadd.f32 %v1114_v30, %v919_v31  ;;  %v924_v35 = vadd.f32 %v1114_v30, %v920_v33 }
 0x5d1   : > { %v925_v23 = vmax.f32 %v923_v34, 0.0  ;;  %v926_v25 = vmax.f32 %v924_v35, 0.0 }
 0x5d3   : > { %927 = vst.msk [vmem:[%s332_s30] sm:$0xff] %vm504_vm3, %v925_v23 }
 0x5d4   : > { %928 = vst.msk [vmem:[%s332_s30 + $0x8] sm:$0xff] %vm504_vm3, %v926_v25 }
 0x5d5 PF: > { %s20_s27 = sadd.s32 1, %s1167_s27  }
 0x5d6   : > { %p17_p7 = scmp.ge.s32.totalorder %s20_s27, 4  }
 0x5d8   :  { %19 = sbr.rel (!%p17_p7) target bundleno = 2 (0x2), region = 96 }
 0x5dd   :  { %950 = vsyncpa [#allocation3], 1 }
 0x5de   :  { %952 = vsyncpa [#allocation3 + $0x1], 1 }
 0x5df   :  { %953 = vsyncpa [#allocation5], 1 }

</bundles_post_ra>
